<compile_context>
chip_gen: v7x
topology: tpu7x:2x2x1
jax: 0.10.0
libtpu: 0.0.40
codegen_flags: <defaults>
</compile_context>

<pallas_src>
import jax
import jax.numpy as jnp
from jax.experimental import pallas as pl
from jax.experimental.pallas import tpu as pltpu


def _round_up(a: int, b: int) -> int:
    return (a + b - 1) // b * b


def _vmem_budget_bytes() -> int:
    """Per-core VMEM budget: ~85% of physical, capped at 112 MiB."""
    try:
        cap = int(pltpu.get_tpu_info().vmem_capacity_bytes)
    except Exception:
        cap = 64 << 20  # conservative (v7x-sized) fallback
    return min(int(cap * 0.85), 112 << 20)


# ---------------------------------------------------------------------------
# Kernels
# ---------------------------------------------------------------------------

def _ffn_kernel_acc(x_ref, w1g_ref, w2_ref, o_ref, acc_ref):
    """Variant with separate f32 accumulator (used when output dtype != f32).

    x_ref  : (tm, Ep)      activation tile (resident across hidden axis)
    w1g_ref: (Ep, 2*th)    fused [lin1 | lin_gate] weight tile
    w2_ref : (th, Ep)      lin2 weight tile
    o_ref  : (tm, Ep)      output tile (written on last hidden step)
    acc_ref: (tm, Ep) f32  accumulator (persists across hidden-axis steps)
    """
    h = pl.program_id(1)
    th = w2_ref.shape[0]

    @pl.when(h == 0)
    def _init():
        acc_ref[...] = jnp.zeros_like(acc_ref)

    x = x_ref[...]
    # one fused MXU matmul for both branches, f32 accumulation
    h12 = jnp.dot(x, w1g_ref[...], preferred_element_type=jnp.float32)
    h1 = h12[:, :th]          # lin1 branch (lane-aligned slice, th % 128 == 0)
    h2 = h12[:, th:]          # gate branch
    gated = (h1 * jax.nn.sigmoid(h1) * h2).astype(w2_ref.dtype)  # sigmoid on EUP
    acc_ref[...] += jnp.dot(gated, w2_ref[...], preferred_element_type=jnp.float32)

    @pl.when(h == pl.num_programs(1) - 1)
    def _store():
        o_ref[...] = acc_ref[...].astype(o_ref.dtype)


def _ffn_kernel_f32out(x_ref, w1g_ref, w2_ref, o_ref):
    """Variant that accumulates directly into the (f32) output block."""
    h = pl.program_id(1)
    th = w2_ref.shape[0]

    @pl.when(h == 0)
    def _init():
        o_ref[...] = jnp.zeros_like(o_ref)

    x = x_ref[...]
    h12 = jnp.dot(x, w1g_ref[...], preferred_element_type=jnp.float32)
    h1 = h12[:, :th]
    h2 = h12[:, th:]
    gated = (h1 * jax.nn.sigmoid(h1) * h2).astype(w2_ref.dtype)
    o_ref[...] += jnp.dot(gated, w2_ref[...], preferred_element_type=jnp.float32)


# ---------------------------------------------------------------------------
# Weight preparation (one-time, at model load)
# ---------------------------------------------------------------------------

def prepare_ffn_weights(w1, wg, w2, *, th=None, compute_dtype=jnp.bfloat16):
    """One-time weight preparation.

    w1, wg: PyTorch nn.Linear weights of shape (H, E); w2: (E, H).
    Transposes to row-major matmul layout, zero-pads E/H to lane-dense
    multiples of 128, fuses [w1 | wg] into one weight, pre-tiles the hidden
    axis so per-step DMAs are contiguous, and casts to bf16 by default.
    """
    H, E = w1.shape
    assert wg.shape == (H, E) and w2.shape == (E, H)
    dt = jnp.dtype(compute_dtype)

    Ep = _round_up(E, 128)
    if th is None:
        # smaller hidden tile on small-VMEM (v7x-like) parts
        th = 256 if _vmem_budget_bytes() < (80 << 20) else 512
    th = max(128, _round_up(min(th, _round_up(H, 128)), 128))
    Hp = _round_up(H, th)
    nH = Hp // th

    w1_t = jnp.pad(jnp.asarray(w1, dtype=dt).T, ((0, Ep - E), (0, Hp - H)))  # (Ep, Hp)
    wg_t = jnp.pad(jnp.asarray(wg, dtype=dt).T, ((0, Ep - E), (0, Hp - H)))  # (Ep, Hp)
    w2_t = jnp.pad(jnp.asarray(w2, dtype=dt).T, ((0, Hp - H), (0, Ep - E)))  # (Hp, Ep)

    # pre-tile per hidden block so each grid step's weight DMA is contiguous
    w1_b = w1_t.reshape(Ep, nH, th).transpose(1, 0, 2)      # (nH, Ep, th)
    wg_b = wg_t.reshape(Ep, nH, th).transpose(1, 0, 2)      # (nH, Ep, th)
    w1g = jnp.concatenate([w1_b, wg_b], axis=-1)            # (nH, Ep, 2*th)
    w2_b = w2_t.reshape(nH, th, Ep)                          # (nH, th, Ep)

    # TODO(synk): optional fp8 (E4M3) weight path with per-tile dequant scales for v7x.
    return dict(w1g=w1g, w2=w2_b, E=E, H=H, Ep=Ep, th=th, nH=nH, dtype=dt)


# ---------------------------------------------------------------------------
# Forward pass
# ---------------------------------------------------------------------------

def _pick_tm(T, Ep, th, bw, bo, use_acc, budget):
    """Largest token tile (multiple of 128) fitting the VMEM budget."""
    cap = _round_up(T, 128)
    weights = 2 * 3 * Ep * th * bw  # [w1|wg] + w2, double-buffered
    for cand in (768, 640, 512, 384, 256, 128):
        per_row = (2 * Ep * bw              # x tile, double-buffered
                   + 2 * Ep * bo            # out tile, double-buffered
                   + (Ep * 4 if use_acc else 0)
                   + 12 * th)               # f32 intermediates (h12, silu, gated)
        need = (cand * per_row + weights) * 1.25 + (2 << 20)
        if need <= budget:
            return min(cand, cap)
    return min(128, cap)


def ffn_pallas(x, params, *, tm=None):
    """x: (B, S, E). params: output of prepare_ffn_weights. Returns (B, S, E)."""
    B, S, E_in = x.shape
    E, Ep, th, nH = params["E"], params["Ep"], params["th"], params["nH"]
    assert E_in == E, f"expected emb_dim={E}, got {E_in}"
    cdt = params["dtype"]
    out_dtype = x.dtype
    f32_out = out_dtype == jnp.float32

    T = B * S
    budget = _vmem_budget_bytes()
    bw = jnp.dtype(cdt).itemsize
    bo = jnp.dtype(out_dtype).itemsize
    if tm is None:
        tm = _pick_tm(T, Ep, th, bw, bo, use_acc=not f32_out, budget=budget)
    tm = min(tm, _round_up(T, 128))
    # v7x has 2 TensorCores: keep >= 2 token-axis grid steps for small batches.
    if budget < (80 << 20) and pl.cdiv(T, tm) < 2 and T > 8:
        tm = max(8, _round_up(pl.cdiv(T, 2), 8))

    # Activations: cast only if compute dtype differs, pad lanes only if needed.
    x2d = x.reshape(T, E)
    if x2d.dtype != cdt:
        x2d = x2d.astype(cdt)
    if Ep != E:
        x2d = jnp.pad(x2d, ((0, 0), (0, Ep - E)))

    if f32_out:
        kernel = _ffn_kernel_f32out
        scratch = []
    else:
        kernel = _ffn_kernel_acc
        scratch = [pltpu.VMEM((tm, Ep), jnp.float32)]

    out2d = pl.pallas_call(
        kernel,
        out_shape=jax.ShapeDtypeStruct((T, Ep), out_dtype),
        grid_spec=pltpu.PrefetchScalarGridSpec(
            num_scalar_prefetch=0,
            grid=(pl.cdiv(T, tm), nH),
            in_specs=[
                pl.BlockSpec((tm, Ep), lambda i, h: (i, 0)),
                pl.BlockSpec((None, Ep, 2 * th), lambda i, h: (h, 0, 0)),
                pl.BlockSpec((None, th, Ep), lambda i, h: (h, 0, 0)),
            ],
            out_specs=pl.BlockSpec((tm, Ep), lambda i, h: (i, 0)),
            scratch_shapes=scratch,
        ),
        compiler_params=pltpu.CompilerParams(
            dimension_semantics=("parallel", "arbitrary"),
            vmem_limit_bytes=int(budget),
        ),
    )(x2d, params["w1g"], params["w2"])

    if Ep != E:
        out2d = out2d[:, :E]
    return out2d.reshape(B, S, E)


# ---------------------------------------------------------------------------
# Reference + self-test
# ---------------------------------------------------------------------------

def ffn_ref(x, w1, wg, w2):
    x1 = x @ w1.T
    x1 = x1 * jax.nn.sigmoid(x1)
    x2 = x @ wg.T
    return (x1 * x2) @ w2.T


if __name__ == "__main__":
    # cfg: emb_dim=32, hidden_dim=64, dtype=float32; batch=2, seq=8
    B, S, E, H = 2, 8, 32, 64
    key = jax.random.PRNGKey(0)
    kx, k1, kg, k2 = jax.random.split(key, 4)

    x = jax.random.normal(kx, (B, S, E), dtype=jnp.float32)
    # PyTorch nn.Linear weight shapes: lin1/lin_gate (H, E), lin2 (E, H)
    w1 = jax.random.normal(k1, (H, E), dtype=jnp.float32) * 0.05
    wg = jax.random.normal(kg, (H, E), dtype=jnp.float32) * 0.05
    w2 = jax.random.normal(k2, (E, H), dtype=jnp.float32) * 0.05

    ref = ffn_ref(x, w1, wg, w2)

    # f32 debug path (matches the module's cfg dtype), tight tolerance.
    params_f32 = prepare_ffn_weights(w1, wg, w2, compute_dtype=jnp.float32)
    out = jax.block_until_ready(ffn_pallas(x, params_f32))
    assert out.shape == (B, S, E)
    assert jnp.allclose(out, ref, atol=1e-5, rtol=1e-5), "f32 mismatch vs reference"

    # bf16 production path (default), loose tolerance.
    params_bf16 = prepare_ffn_weights(w1, wg, w2)
    out_bf16 = jax.block_until_ready(ffn_pallas(x, params_bf16))
    assert jnp.allclose(out_bf16.astype(jnp.float32), ref, atol=3e-2, rtol=3e-2), \
        "bf16 mismatch vs reference"

    print("KERNEL_OK")
</pallas_src>

<mosaic_0001>
module attributes {stable_mosaic.version = 11 : i64} {
  func.func @_ffn_kernel_f32out(%arg0: i32, %arg1: i32, %arg2: memref<8x128xf32, #tpu.memory_space<vmem>>, %arg3: memref<1x128x256xf32, #tpu.memory_space<vmem>>, %arg4: memref<1x128x128xf32, #tpu.memory_space<vmem>>, %arg5: memref<8x128xf32, #tpu.memory_space<vmem>>) attributes {dimension_semantics = [#tpu.dimension_semantics<parallel>, #tpu.dimension_semantics<arbitrary>], iteration_bounds = array<i64: 2, 1>, scalar_prefetch = 0 : i64, scratch_operands = 0 : i64, tpu.core_type = #tpu.core_type<tc>, window_params = [{transform_indices = @transform_0, window_bounds = array<i64: 8, 128>}, {transform_indices = @transform_1, window_bounds = array<i64: 1, 128, 256>}, {transform_indices = @transform_2, window_bounds = array<i64: 1, 128, 128>}, {transform_indices = @transform_3, window_bounds = array<i64: 8, 128>}]} {
    %c0_i32 = arith.constant 0 : i32
    %0 = arith.cmpi eq, %arg1, %c0_i32 : i32
    %1 = arith.extui %0 : i1 to i32
    %c0_i32_0 = arith.constant 0 : i32
    %2 = arith.cmpi ne, %1, %c0_i32_0 : i32
    scf.if %2 {
      %cst_14 = arith.constant 0.000000e+00 : f32
      %22 = vector.broadcast %cst_14 : f32 to vector<8x128xf32>
      %c0_15 = arith.constant 0 : index
      %c0_16 = arith.constant 0 : index
      %23 = vector.load %arg5[%c0_15, %c0_16] : memref<8x128xf32, #tpu.memory_space<vmem>>, vector<8x128xf32>
      tpu.vector_store %arg5[%c0_15, %c0_16], %22 {strides = array<i32>} : memref<8x128xf32, #tpu.memory_space<vmem>>, vector<8x128xf32>,
    } else {
    }
    %c0 = arith.constant 0 : index
    %c0_1 = arith.constant 0 : index
    %3 = vector.load %arg2[%c0, %c0_1] : memref<8x128xf32, #tpu.memory_space<vmem>>, vector<8x128xf32>
    %c0_2 = arith.constant 0 : index
    %c0_3 = arith.constant 0 : index
    %c0_4 = arith.constant 0 : index
    %4 = vector.load %arg3[%c0_2, %c0_3, %c0_4] : memref<1x128x256xf32, #tpu.memory_space<vmem>>, vector<1x128x256xf32>
    %5 = vector.shape_cast %4 : vector<1x128x256xf32> to vector<128x256xf32>
    %cst = arith.constant dense<0.000000e+00> : vector<8x256xf32>
    %6 = tpu.matmul %3, %5, %cst {dimension_numbers = #tpu.dot_dimension_numbers<[1], [0], [0], [1], [0, 0, 1, 1], [], []>} : vector<8x128xf32>, vector<128x256xf32>, vector<8x256xf32> -> vector<8x256xf32>
    %7 = vector.extract_strided_slice %6 {offsets = [0, 0], sizes = [8, 128], strides = [1, 1]} : vector<8x256xf32> to vector<8x128xf32>
    %8 = vector.extract_strided_slice %6 {offsets = [0, 128], sizes = [8, 128], strides = [1, 1]} : vector<8x256xf32> to vector<8x128xf32>
    %9 = arith.negf %7 : vector<8x128xf32>
    %10 = math.exp %9 : vector<8x128xf32>
    %cst_5 = arith.constant 1.000000e+00 : f32
    %11 = vector.broadcast %cst_5 : f32 to vector<8x128xf32>
    %12 = arith.addf %11, %10 : vector<8x128xf32>
    %13 = arith.divf %11, %12 : vector<8x128xf32>
    %14 = arith.mulf %7, %13 : vector<8x128xf32>
    %15 = arith.mulf %14, %8 : vector<8x128xf32>
    %c0_6 = arith.constant 0 : index
    %c0_7 = arith.constant 0 : index
    %16 = vector.load %arg5[%c0_6, %c0_7] : memref<8x128xf32, #tpu.memory_space<vmem>>, vector<8x128xf32>
    %c0_8 = arith.constant 0 : index
    %c0_9 = arith.constant 0 : index
    %c0_10 = arith.constant 0 : index
    %17 = vector.load %arg4[%c0_8, %c0_9, %c0_10] : memref<1x128x128xf32, #tpu.memory_space<vmem>>, vector<1x128x128xf32>
    %18 = vector.shape_cast %17 : vector<1x128x128xf32> to vector<128x128xf32>
    %cst_11 = arith.constant dense<0.000000e+00> : vector<8x128xf32>
    %19 = tpu.matmul %15, %18, %cst_11 {dimension_numbers = #tpu.dot_dimension_numbers<[1], [0], [0], [1], [0, 0, 1, 1], [], []>} : vector<8x128xf32>, vector<128x128xf32>, vector<8x128xf32> -> vector<8x128xf32>
    %20 = arith.addf %16, %19 : vector<8x128xf32>
    %c0_12 = arith.constant 0 : index
    %c0_13 = arith.constant 0 : index
    %21 = vector.load %arg5[%c0_12, %c0_13] : memref<8x128xf32, #tpu.memory_space<vmem>>, vector<8x128xf32>
    tpu.vector_store %arg5[%c0_12, %c0_13], %20 {strides = array<i32>} : memref<8x128xf32, #tpu.memory_space<vmem>>, vector<8x128xf32>,
    return
  }
  func.func @transform_0(%arg0: i32, %arg1: i32) -> (i32, i32) {
    %c0_i32 = arith.constant 0 : i32
    %c0_i32_0 = arith.constant 0 : i32
    return %arg0, %c0_i32 : i32, i32
  }
  func.func @transform_1(%arg0: i32, %arg1: i32) -> (i32, i32, i32) {
    %c0_i32 = arith.constant 0 : i32
    %c0_i32_0 = arith.constant 0 : i32
    %c0_i32_1 = arith.constant 0 : i32
    return %arg1, %c0_i32, %c0_i32_0 : i32, i32, i32
  }
  func.func @transform_2(%arg0: i32, %arg1: i32) -> (i32, i32, i32) {
    %c0_i32 = arith.constant 0 : i32
    %c0_i32_0 = arith.constant 0 : i32
    %c0_i32_1 = arith.constant 0 : i32
    return %arg1, %c0_i32, %c0_i32_0 : i32, i32, i32
  }
  func.func @transform_3(%arg0: i32, %arg1: i32) -> (i32, i32) {
    %c0_i32 = arith.constant 0 : i32
    %c0_i32_0 = arith.constant 0 : i32
    return %arg0, %c0_i32 : i32, i32
  }
}

</mosaic_0001>

<bundles_post_ra>
// kernel: tpu_custom_call.1
= control target key start
LH: loop header
LB: loop body
LE: loop exit
PB: predicated region body
PF: predicated region fallthrough
CT: control target
= control target key end

     0   :  { %8 = vsyncpa [#allocation3], 0  ;;  %s1256_s0 = inlined_call_operand.hbm [shape: f32[16,128], index: 0, kind: input, shape index: {}]   ;;  %s1257_s1 = inlined_call_operand.hbm [shape: f32[1,128,256], index: 1, kind: input, shape index: {}]   ;;  %s1258_s2 = inlined_call_operand.hbm [shape: f32[1,128,128], index: 2, kind: input, shape index: {}]   ;;  %s1259_s3 = inlined_call_operand.hbm [shape: f32[16,128], index: 3, kind: output, shape index: {}]  }
   0x1   :  { %10 = vsyncpa [#allocation3 + $0x1], 0 }
   0x2   :  { %11 = vsyncpa [#allocation6], 0 }
   0x3   :  { %12 = vsyncpa [#allocation4], 0 }
   0x4   :  { %14 = vsyncpa [#allocation4 + $0x1], 0  ;;  %s989_s12 = smov 0   ;;  %s991_s13 = smov 0  }
   0x5   :  { %s993_s14 = smov 0   ;;  %s995_s15 = smov 0  }
   0x6   :  { %s997_s16 = smov 0   ;;  %s999_s17 = smov 0  }
   0x7 LB: > { %s564_s18 = sadd.s32 4294967295, %s956_s17   ;;  %s565_s19 = sadd.s32 4294967294, %s956_s17   ;;  %s956_s17 = sphi %s999_s17, %s20_s17   ;;  %s952_s16 = sphi %s997_s16, %s1281_s16   ;;  %s948_s15 = sphi %s995_s15, %s1280_s15   ;;  %s944_s14 = sphi %s993_s14, %s1279_s14   ;;  %s940_s13 = sphi %s991_s13, %s1278_s13   ;;  %s936_s12 = sphi %s989_s12, %s1277_s12  }
   0x8   : > { %p52_p0 = scmp.ne.s32.totalorder %s940_s13, %s936_s12  ;;  %p1023_p1 = scmp.eq.s32.totalorder %s564_s18, 0 }
   0x9   : > { %p1027_p2 = scmp.eq.s32.totalorder %s564_s18, 1  ;;  %p134_p3 = scmp.eq.s32.totalorder %s565_s19, 1 }
   0xa   : > { %s1264_s20 = scalar_select %p1023_p1, 1, 0 }
   0xb   : > { %p1033_p4 = por %p1023_p1, %p52_p0  ;;  %p566_p5 = scmp.ge.s32.totalorder %s956_s17, 1 }
   0xc   : > { %p1038_p6 = por %p134_p3, %p52_p0  ;;  %p141_p7 = scmp.lt.s32.totalorder %s956_s17, 3 }
   0xd   : > { %s1266_s22 = scalar_select %p1033_p4, 1, 0 }
   0xe   : > { %s1267_s23 = scalar_select %p1038_p6, 1, 0 }
   0xf   : > { %p1043_p8 = pnand %p566_p5, %p141_p7  ;;  %s958_s25 = smov [#allocation5]  }
  0x10   : > { %s156_s26 = sshll.u32 %s958_s25, 4  ;;  %s959_s28 = smov [#allocation7]   ;;  %s1047_s26 = int_to_ptr.vmem [resolvable:$true] %s156_s26 }
  0x11   : > { %p702_p9 = pneg %p1043_p8  ;;  %s172_s29 = sshll.u32 %s959_s28, 4  ;;  %s1058_s29 = int_to_ptr.vmem [resolvable:$true] %s172_s29 }
  0x12   : > { %s784_s5 = scalar_lea.hbm %s1257_s1, 4096 }
  0x13   : > { %p1054_p11 = pnand %p702_p9, %p1023_p1  ;;  %p785_p12 = scmp.ne.s32.totalorder %s1257_s1, %s784_s5 }
  0x14   : > { %p791_p5 = scmp.lt.u32.totalorder %s784_s5, %s1257_s1 }
  0x15   : > { %p786_p13 = pneg %p1054_p11 }
  0x17   : > { %p787_p0 = pnand %p786_p13, %p785_p12 }
  0x19   : > { %p788_p3 = pneg %p787_p0 }
  0x1b   : > { %p793_p7 = pnand %p791_p5, %p788_p3 }
  0x1d   : > { %796 = shalt.err (!%p793_p7)
}
  0x1e   : > { %s797_s10 = scalar_lea.vmem %s1047_s26, 4096  ;;  %p805_p1 = scmp.lt.s32.totalorder %s1047_s26, %s1047_s26 }
  0x1f   : > { %p798_p9 = scmp.ne.s32.totalorder %s1047_s26, %s797_s10  ;;  %p806_p12 = scmp.lt.s32.totalorder %s797_s10, %s797_s10 }
  0x21   : > { %p800_p10 = pnand %p798_p9, %p786_p13  ;;  %p807_p0 = por %p806_p12, %p805_p1 }
  0x23   : > { %p801_p6 = pneg %p800_p10 }
  0x25   : > { %p808_p4 = pnand %p807_p0, %p801_p6 }
  0x27   : > { %811 = shalt.err (!%p808_p4)
}
  0x28   : > { %s960_s11 = smov 256   ;;  %s961_s18 = smov 16  }
  0x29   : > { %705 = dma.hbm_to_vmem [thread:$0]  (!%p1054_p11), %s1257_s1, 4096, %s1047_s26, [#allocation6], %s960_s11, %s960_s11, %s961_s18  }
  0x2a   : > { %s812_s4 = scalar_lea.hbm %s1258_s2, 2048 }
  0x2b   : > { %p813_p1 = scmp.ne.s32.totalorder %s1258_s2, %s812_s4  ;;  %p819_p10 = scmp.lt.u32.totalorder %s812_s4, %s1258_s2 }
  0x2d   : > { %p815_p4 = pnand %p813_p1, %p786_p13 }
  0x2f   : > { %p816_p6 = pneg %p815_p4 }
  0x31   : > { %p821_p3 = pnand %p819_p10, %p816_p6 }
  0x33   : > { %824 = shalt.err (!%p821_p3)
}
  0x34   : > { %s825_s26 = scalar_lea.vmem %s1058_s29, 2048  ;;  %p833_p12 = scmp.lt.s32.totalorder %s1058_s29, %s1058_s29 }
  0x35   : > { %p826_p5 = scmp.ne.s32.totalorder %s1058_s29, %s825_s26  ;;  %p834_p0 = scmp.lt.s32.totalorder %s825_s26, %s825_s26 }
  0x37   : > { %p828_p7 = pnand %p826_p5, %p786_p13  ;;  %p835_p1 = por %p834_p0, %p833_p12 }
  0x39   : > { %p829_p9 = pneg %p828_p7 }
  0x3b   : > { %p836_p4 = pnand %p835_p1, %p829_p9 }
  0x3d   : > { %839 = shalt.err (!%p836_p4)
}
  0x3e   : > { %s962_s9 = smov 128   ;;  %s963_s10 = smov 8  }
  0x3f   : > { %708 = dma.hbm_to_vmem [thread:$0]  (!%p1054_p11), %s1258_s2, 2048, %s1058_s29, [#allocation6], %s962_s9, %s962_s9, %s963_s10  }
  0x40   : > { %s32_s19 = sadd.s32 1, %s952_s16  ;;  %s39_s25 = sadd.s32 1, %s944_s14 }
  0x41   : > { %p34_p13 = scmp.ge.s32.totalorder %s32_s19, 2  ;;  %p46_p6 = scmp.ne.s32.totalorder %s944_s14, %s940_s13 }
  0x42   : > { %p47_p10 = scmp.eq.s32.totalorder %s956_s17, 0  ;;  %p719_p3 = scmp.lt.s32.totalorder %s956_s17, 2 }
  0x43   : > { %s1283_s19 = smov (%p34_p13, %s32_s19), 0  ;;  %p1122_p7 = por %p1027_p2, %p46_p6 }
  0x44   : > { %p48_p5 = por %p47_p10, %p46_p6  ;;  %s36_s27 = ssub.s32 %s952_s16, %s1283_s19 }
  0x45   : > { %s1270_s28 = scalar_select %p1122_p7, 1, 0 }
  0x46   : > { %s186_s30 = sand.u32 1, %s944_s14   ;;  %p37_p9 = scmp.eq.s32.totalorder %s36_s27, 0 }
  0x47   : > { %s570_s29 = sshll.u32 %s186_s30, 3  ;;  %s571_s4 = sshll.u32 %s952_s16, 7 }
  0x48   : > { %s1131_s5 = scalar_select %p37_p9, %s944_s14, %s39_s25  }
  0x49   : > { %s1136_s8 = scalar_lea.hbm %s1256_s0, %s571_s4  ;;  %s190_s21 = scalar_lea.vmem [#allocation2], %s570_s29 }
  0x4a   : > { %s197_s26 = sshll.u32 %s190_s21, 4  ;;  %p1140_p2 = pnand %p719_p3, %p48_p5  ;;  %s1144_s26 = int_to_ptr.vmem [resolvable:$true] %s197_s26 }
  0x4b   : > { %s187_s10 = scalar_lea.sflag [#allocation3], %s186_s30  ;;  %s840_s11 = scalar_lea.hbm %s1136_s8, 128 }
  0x4c   : > { %p841_p11 = scmp.ne.s32.totalorder %s1136_s8, %s840_s11  ;;  %p842_p12 = pneg %p1140_p2 }
  0x4d   : > { %s845_s27 = scalar_lea.hbm %s1256_s0, 256  ;;  %p846_p4 = scmp.lt.u32.totalorder %s1136_s8, %s1256_s0 }
  0x4e   : > { %p843_p0 = pnand %p842_p12, %p841_p11  ;;  %p847_p13 = scmp.lt.u32.totalorder %s845_s27, %s840_s11 }
  0x4f   : > { %p849_p10 = scmp.lt.u32.totalorder %s840_s11, %s1136_s8 }
  0x50   : > { %p844_p1 = pneg %p843_p0  ;;  %p848_p6 = por %p847_p13, %p846_p4 }
  0x52   : > { %p850_p3 = por %p849_p10, %p848_p6 }
  0x54   : > { %p851_p5 = pnand %p850_p3, %p844_p1 }
  0x56   : > { %854 = shalt.err (!%p851_p5)
}
  0x57   : > { %s855_s30 = scalar_lea.vmem %s1144_s26, 128  ;;  %s964_s6 = smov [#allocation2]  }
  0x58   : > { %p856_p9 = scmp.ne.s32.totalorder %s1144_s26, %s855_s30  ;;  %s860_s7 = sshll.u32 %s964_s6, 4  ;;  %s861_s7 = int_to_ptr.vmem [resolvable:$false] %s860_s7 }
  0x59   : > { %s862_s21 = scalar_lea.vmem %s861_s7, 256  ;;  %p863_p7 = scmp.lt.s32.totalorder %s1144_s26, %s861_s7 }
  0x5a   : > { %p858_p11 = pnand %p856_p9, %p842_p12  ;;  %p864_p4 = scmp.lt.s32.totalorder %s862_s21, %s855_s30 }
  0x5c   : > { %p859_p0 = pneg %p858_p11  ;;  %p865_p13 = por %p864_p4, %p863_p7 }
  0x5e   : > { %p866_p6 = pnand %p865_p13, %p859_p0 }
  0x60   : > { %869 = shalt.err (!%p866_p6)
}
  0x61   : > { %712 = dma.hbm_to_vmem [thread:$0]  (!%p1140_p2), %s1136_s8, 128, %s1144_s26, %s187_s10  }
  0x62   : > { %206 = sbr.rel (%p1043_p8) target bundleno = 612 (0x264), region = 32  ;;  %s1174_s11 = sand.u32 (!%p1043_p8), 1, %s940_s13  }
  0x63   : > { %s573_s18 = sshll.u32 (!%p1043_p8), %s1174_s11, 3  ;;  %s209_s25 = scalar_lea.sflag (!%p1043_p8), [#allocation3], %s1174_s11 }
  0x64   : > { %s1180_s27 = scalar_lea.vmem (!%p1043_p8), [#allocation2], %s573_s18  ;;  %p1272_p7 = scmp.ne.s32.totalorder (!%p1043_p8), %s1266_s22, 0 }
  0x69   : > { %923 = dma.done.wait (%p1272_p7), %s209_s25, 128  }
  0x6a   : > { %925 = vsyncadd (%p1272_p7), %s209_s25, 4294967168  ;;  %p1273_p2 = scmp.ne.s32.totalorder %s1264_s20, 0 }
  0x6c   : > { %927 = dma.done.wait (%p1273_p2), [#allocation6], 6144  }
  0x6d   : > { %929 = vsyncadd (%p1273_p2), [#allocation6], 4294961152  ;;  %v965_v0 = vmov 0.0   ;;  %v966_v1 = vmov 0.0|0.0   ;;  %v250_v2 = vld [vmem:[#allocation5 + $0x8] sm:$0xff]  ;;  %v252_v3 = vld [vmem:[#allocation5 + $0x18] sm:$0xff] }
  0x6e   : > { %345 = vmatprep.mubr.f32.mxu0 %v965_v0  ;;  %666 = vmatprep.subr.bf16.mxu1 %v966_v1  ;;  %v249_v4 = vld [vmem:[#allocation5] sm:$0xff]  ;;  %v634_v5 = vpack.c.bf16 %v252_v3, %v250_v2  ;;  %v251_v6 = vld [vmem:[#allocation5 + $0x10] sm:$0xff]  ;;  %v254_v7 = vld [vmem:[#allocation5 + $0x28] sm:$0xff]  ;;  %vm967_vm0 = vmmov 0   ;;  %s579_s20 = sshll.u32 %s948_s15, 7  ;;  %s242_s22 = scalar_lea.vmem [#allocation8], %s573_s18 }
  0x6f   : > { %v256_v8 = vld [vmem:[#allocation5 + $0x38] sm:$0xff]  ;;  %v636_v9 = vpack.c.bf16 %v251_v6, %v249_v4  ;;  %v253_v11 = vld [vmem:[#allocation5 + $0x20] sm:$0xff]  ;;  %v255_v12 = vld [vmem:[#allocation5 + $0x30] sm:$0xff]  ;;  %631 = vmatprep.mubr.msk.f32.mxu1 %vm967_vm0, %v965_v0  ;;  %s463_s24 = sshll.u32 %s242_s22, 4  ;;  %s1207_s9 = scalar_lea.hbm %s1259_s3, %s579_s20  ;;  %s1209_s24 = int_to_ptr.vmem [resolvable:$true] %s463_s24 }
  0x70   : > { %v638_v10 = vpack.c.bf16 %v256_v8, %v254_v7  ;;  %v258_v13 = vld [vmem:[#allocation5 + $0x48] sm:$0xff]  ;;  %635 = vmatprep.subr.bf16.mxu0 %v634_v5  ;;  %v260_v14 = vld [vmem:[#allocation5 + $0x58] sm:$0xff]  ;;  %v640_v15 = vpack.c.bf16 %v255_v12, %v253_v11  ;;  %v257_v17 = vld [vmem:[#allocation5 + $0x40] sm:$0xff]  ;;  %s450_s10 = scalar_lea.sflag [#allocation4], %s1174_s11  ;;  %s870_s29 = scalar_lea.vmem %s1209_s24, 128 }
  0x71   : > { %637 = vmatpush1.bf16.msra.mxu0 %v636_v9  ;;  %v642_v16 = vpack.c.bf16 %v260_v14, %v258_v13  ;;  %v259_v18 = vld [vmem:[#allocation5 + $0x50] sm:$0xff]  ;;  %v262_v19 = vld [vmem:[#allocation5 + $0x68] sm:$0xff]  ;;  %v264_v20 = vld [vmem:[#allocation5 + $0x78] sm:$0xff]  ;;  %p871_p8 = scmp.ne.s32.totalorder %s1209_s24, %s870_s29  ;;  %p1274_p12 = scmp.ne.s32.totalorder %s1270_s28, 0 }
  0x72   : > { %639 = vmatprep.subr.bf16.mxu0 %v638_v10  ;;  %v644_v21 = vpack.c.bf16 %v259_v18, %v257_v17  ;;  %v646_v22 = vpack.c.bf16 %v264_v20, %v262_v19  ;;  %v261_v23 = vld [vmem:[#allocation5 + $0x60] sm:$0xff]  ;;  %v263_v24 = vld [vmem:[#allocation5 + $0x70] sm:$0xff]  ;;  %v266_v25 = vld [vmem:[#allocation5 + $0x88] sm:$0xff]  ;;  %s968_s15 = smov [#allocation8]  }
  0x73   : > { %v268_v26 = vld [vmem:[#allocation5 + $0x98] sm:$0xff]  ;;  %v648_v27 = vpack.c.bf16 %v263_v24, %v261_v23  ;;  %v265_v29 = vld [vmem:[#allocation5 + $0x80] sm:$0xff]  ;;  %v267_v30 = vld [vmem:[#allocation5 + $0x90] sm:$0xff]  ;;  %p872_p1 = pnand %p871_p8, %p1274_p12  ;;  %s874_s4 = sshll.u32 %s968_s15, 4  ;;  %s875_s4 = int_to_ptr.vmem [resolvable:$false] %s874_s4 }
  0x74   : > { %v650_v28 = vpack.c.bf16 %v268_v26, %v266_v25  ;;  %v270_v31 = vld [vmem:[#allocation5 + $0xa8] sm:$0xff]  ;;  %v272_v32 = vld [vmem:[#allocation5 + $0xb8] sm:$0xff]  ;;  %v652_v33 = vpack.c.bf16 %v267_v30, %v265_v29  ;;  %v269_v35 = vld [vmem:[#allocation5 + $0xa0] sm:$0xff]  ;;  %s876_s30 = scalar_lea.vmem %s875_s4, 256  ;;  %p877_p3 = scmp.lt.s32.totalorder %s1209_s24, %s875_s4 }
  0x75   : > { %641 = vmatpush1.bf16.msra.mxu0 %v640_v15  ;;  %v654_v34 = vpack.c.bf16 %v272_v32, %v270_v31  ;;  %v271_v36 = vld [vmem:[#allocation5 + $0xb0] sm:$0xff]  ;;  %v274_v37 = vld [vmem:[#allocation5 + $0xc8] sm:$0xff]  ;;  %v276_v38 = vld [vmem:[#allocation5 + $0xd8] sm:$0xff]  ;;  %p873_p10 = pneg %p872_p1  ;;  %p878_p5 = scmp.lt.s32.totalorder %s876_s30, %s870_s29 }
  0x76   : > { %643 = vmatprep.subr.bf16.mxu0 %v642_v16  ;;  %v656_v39 = vpack.c.bf16 %v271_v36, %v269_v35  ;;  %v658_v40 = vpack.c.bf16 %v276_v38, %v274_v37  ;;  %v273_v41 = vld [vmem:[#allocation5 + $0xc0] sm:$0xff]  ;;  %v275_v42 = vld [vmem:[#allocation5 + $0xd0] sm:$0xff]  ;;  %v278_v43 = vld [vmem:[#allocation5 + $0xe8] sm:$0xff] }
  0x77   : > { %v280_v44 = vld [vmem:[#allocation5 + $0xf8] sm:$0xff]  ;;  %v660_v45 = vpack.c.bf16 %v275_v42, %v273_v41  ;;  %v277_v47 = vld [vmem:[#allocation5 + $0xe0] sm:$0xff]  ;;  %v279_v48 = vld [vmem:[#allocation5 + $0xf0] sm:$0xff]  ;;  %p879_p9 = por %p878_p5, %p877_p3 }
  0x78   : > { %v662_v46 = vpack.c.bf16 %v280_v44, %v278_v43  ;;  %v664_v49 = vpack.c.bf16 %v279_v48, %v277_v47  ;;  %v248_v50 = vld [vmem:[%s1180_s27] sm:$0xff]  ;;  %v361_v51 = vld [vmem:[#allocation7] sm:$0xff]  ;;  %v362_v52 = vld [vmem:[#allocation7 + $0x8] sm:$0xff] }
  0x79   : > { %645 = vmatpush1.bf16.msra.mxu0 %v644_v21  ;;  %v667_v53 = vpack.c.bf16 %v362_v52, %v361_v51  ;;  %v363_v54 = vld [vmem:[#allocation7 + $0x10] sm:$0xff]  ;;  %v364_v55 = vld [vmem:[#allocation7 + $0x18] sm:$0xff]  ;;  %v365_v57 = vld [vmem:[#allocation7 + $0x20] sm:$0xff]  ;;  %p880_p11 = pnand %p879_p9, %p873_p10 }
  0x7a   : > { %647 = vmatprep.subr.bf16.mxu0 %v646_v22  ;;  %v670_v56 = vpack.c.bf16 %v364_v55, %v363_v54  ;;  %v366_v58 = vld [vmem:[#allocation7 + $0x28] sm:$0xff]  ;;  %v367_v60 = vld [vmem:[#allocation7 + $0x30] sm:$0xff]  ;;  %v368_v61 = vld [vmem:[#allocation7 + $0x38] sm:$0xff] }
  0x7b   : > { %668 = vmatpush3.bf16.msra.mxu1 %v667_v53  ;;  %v673_v59 = vpack.c.bf16 %v366_v58, %v365_v57  ;;  %v676_v62 = vpack.c.bf16 %v368_v61, %v367_v60  ;;  %v369_v63 = vld [vmem:[#allocation7 + $0x40] sm:$0xff]  ;;  %v370_v2 = vld [vmem:[#allocation7 + $0x48] sm:$0xff]  ;;  %v371_v4 = vld [vmem:[#allocation7 + $0x50] sm:$0xff] }
  0x7c   : > { %669 = vmatprep.subr.bf16.mxu1 %v966_v1  ;;  %v679_v3 = vpack.c.bf16 %v370_v2, %v369_v63  ;;  %v372_v5 = vld [vmem:[#allocation7 + $0x58] sm:$0xff]  ;;  %v373_v7 = vld [vmem:[#allocation7 + $0x60] sm:$0xff]  ;;  %v374_v8 = vld [vmem:[#allocation7 + $0x68] sm:$0xff] }
  0x7d   : > { %649 = vmatpush1.bf16.msra.mxu0 %v648_v27  ;;  %v682_v6 = vpack.c.bf16 %v372_v5, %v371_v4  ;;  %v685_v9 = vpack.c.bf16 %v374_v8, %v373_v7  ;;  %v375_v10 = vld [vmem:[#allocation7 + $0x70] sm:$0xff]  ;;  %v376_v11 = vld [vmem:[#allocation7 + $0x78] sm:$0xff] }
  0x7e   : > { %651 = vmatprep.subr.bf16.mxu0 %v650_v28  ;;  %v688_v12 = vpack.c.bf16 %v376_v11, %v375_v10 }
  0x7f   : > { %671 = vmatpush3.bf16.msra.mxu1 %v670_v56 }
  0x80   : > { %672 = vmatprep.subr.bf16.mxu1 %v966_v1 }
  0x81   : > { %653 = vmatpush1.bf16.msra.mxu0 %v652_v33 }
  0x82   : > { %655 = vmatprep.subr.bf16.mxu0 %v654_v34 }
  0x83   : > { %674 = vmatpush3.bf16.msra.mxu1 %v673_v59 }
  0x84   : > { %675 = vmatprep.subr.bf16.mxu1 %v966_v1 }
  0x85   : > { %657 = vmatpush1.bf16.msra.mxu0 %v656_v39 }
  0x86   : > { %659 = vmatprep.subr.bf16.mxu0 %v658_v40 }
  0x87   : > { %677 = vmatpush3.bf16.msra.mxu1 %v676_v62 }
  0x88   : > { %678 = vmatprep.subr.bf16.mxu1 %v966_v1 }
  0x89   : > { %661 = vmatpush1.bf16.msra.mxu0 %v660_v45 }
  0x8a   : > { %663 = vmatprep.subr.bf16.mxu0 %v662_v46 }
  0x8b   : > { %680 = vmatpush3.bf16.msra.mxu1 %v679_v3 }
  0x8c   : > { %681 = vmatprep.subr.bf16.mxu1 %v966_v1 }
  0x8d   : > { %665 = vmatpush1.bf16.msra.mxu0 %v664_v49 }
  0x8f   : > { %683 = vmatpush3.bf16.msra.mxu1 %v682_v6 }
  0x90   : > { %346 = vmatmul.mubr.f32.vlgmr.msra.gmra.mrb[0].mxu0 %v248_v50  ;;  %684 = vmatprep.subr.bf16.mxu1 %v966_v1 }
  0x93   : > { %686 = vmatpush3.bf16.msra.mxu1 %v685_v9 }
  0x94   : > { %687 = vmatprep.subr.bf16.mxu1 %v966_v1 }
  0x97   : > { %689 = vmatpush3.bf16.msra.mxu1 %v688_v12 }
 0x163   : > { %v347_v13 = vpop.f32.mrb[0].mxu0 }
 0x164   : > { %v577_v14 = vmul.f32 -1.442695, %v347_v13  ;;  %v349_v15 = vpop.f32.mrb[1].mxu0 }
 0x166   : > { %780 = vpow2.f32 %v577_v14 }
 0x170   : > { %v781_v16 = vpop.eup %780 }
 0x171   : > { %v355_v17 = vadd.f32 1.0, %v781_v16 }
 0x173   : > { %782 = vrcp.f32 %v355_v17 }
 0x17d   : > { %v783_v18 = vpop.eup %782 }
 0x17e   : > { %v358_v1 = vmul.f32 %v783_v18, %v347_v13 }
 0x180   : > { %v359_v19 = vmul.f32 %v358_v1, %v349_v15 }
 0x182   : > { %632 = vmatmul.mubr.f32.vlgmr.msra.gmra.mrb[0].mxu1 %v359_v19 }
 0x255   : > { %v443_v20 = vpop.f32.mrb[0].mxu1 }
 0x256   : > { %v633_v21 = vpop.f32.mrb[1].mxu1  ;;  %448 = vst [vmem:[%s242_s22] sm:$0xff] %v443_v20 }
 0x257   : > { %883 = shalt.err (!%p880_p11)
}
 0x258   : > { %s884_s6 = scalar_lea.hbm %s1207_s9, 128  ;;  %s888_s11 = scalar_lea.hbm %s1259_s3, 256 }
 0x259   : > { %p885_p0 = scmp.ne.s32.totalorder %s1207_s9, %s884_s6  ;;  %p889_p6 = scmp.lt.u32.totalorder %s1207_s9, %s1259_s3 }
 0x25a   : > { %p890_p7 = scmp.lt.u32.totalorder %s888_s11, %s884_s6  ;;  %p892_p8 = scmp.lt.u32.totalorder %s884_s6, %s1207_s9 }
 0x25b   : > { %p886_p4 = pnand %p885_p0, %p1274_p12 }
 0x25c   : > { %p891_p2 = por %p890_p7, %p889_p6 }
 0x25d   : > { %p887_p13 = pneg %p886_p4 }
 0x25e   : > { %p893_p1 = por %p892_p8, %p891_p2 }
 0x260   : > { %p894_p10 = pnand %p893_p1, %p887_p13 }
 0x262   : > { %897 = shalt.err (!%p894_p10)
}
 0x263   : > { %700 = dma.vmem_to_hbm [thread:$0]  (%p1274_p12), %s1209_s24, 128, %s1207_s9, %s450_s10  }
 0x264 PF: > { %s475_s27 = sand.u32 1, %s936_s12   ;;  %p1275_p3 = scmp.ne.s32.totalorder %s1267_s23, 0 }
 0x265   : > { %p1276_p5 = scmp.ge.s32.totalorder %s956_s17, 2  ;;  %s476_s20 = scalar_lea.sflag [#allocation4], %s475_s27 }
 0x267   : > { %p714_p9 = pnand %p1276_p5, %p1275_p3 }
 0x269   : > { %931 = dma.done.wait (!%p714_p9), %s476_s20, 128  }
 0x26a   : > { %933 = vsyncadd (!%p714_p9), %s476_s20, 4294967168  ;;  %s20_s17 = sadd.s32 1, %s956_s17   ;;  %s1277_s12 = smov %s940_s13 }
 0x26b   : > { %p17_p11 = scmp.ge.s32.totalorder %s20_s17, 4   ;;  %s1278_s13 = smov %s944_s14 }
 0x26c   : > { %s1279_s14 = smov %s1131_s5  ;;  %s1280_s15 = smov %s952_s16 }
 0x26d   : > { %s1281_s16 = smov %s1283_s19  ;;  %19 = sbr.rel (!%p17_p11) target bundleno = 7 (0x7), region = 91 }
 0x274   :  { %481 = vsyncpa [#allocation3], 1 }
 0x275   :  { %483 = vsyncpa [#allocation3 + $0x1], 1 }
 0x276   :  { %484 = vsyncpa [#allocation6], 1 }
 0x277   :  { %485 = vsyncpa [#allocation4], 1 }
 0x278   :  { %487 = vsyncpa [#allocation4 + $0x1], 1 }

</bundles_post_ra>
